<compile_context>
chip_gen: v5e
topology: v5e:2x2
jax: 0.10.0
libtpu: 0.0.40
codegen_flags: <defaults>
</compile_context>

<pallas_src>
import jax
import jax.numpy as jnp
from jax import lax
from jax.experimental import pallas as pl
from jax.experimental.pallas import tpu as pltpu


# ---------------------------------------------------------------------------
# Shared-weight path (individual=False)
#   out^T[:, m] = W @ x^T[:, m] + b       with m ranging over M = B*C lanes
# ---------------------------------------------------------------------------
def _shared_linear_kernel(w_ref, b_ref, xt_ref, ot_ref):
    # w_ref : (P, S)   weight, resident (constant index_map -> single DMA)
    # b_ref : (P, 1)   bias, resident
    # xt_ref: (S, TM)  one lane-dense tile of x^T
    # ot_ref: (P, TM)  matching lane-dense tile of out^T
    acc = jnp.dot(w_ref[...], xt_ref[...], preferred_element_type=jnp.float32)
    acc = acc + b_ref[...]                       # (P, 1) broadcasts across lanes
    ot_ref[...] = acc.astype(ot_ref.dtype)


def _predict_shared(x, weight, bias, out_dtype):
    B, C, S = x.shape
    P = weight.shape[0]
    M = B * C

    # Lane-dense layout: merged batch M on the last (lane) axis of both the
    # input tile and the output tile; S is the (small) contraction axis.
    xt = x.reshape(M, S).T                       # (S, M)

    TM_MAX = 512                                 # 128-aligned, small VMEM footprint
    if M <= TM_MAX:
        tm, m_pad = M, M                         # single full-extent tile
    else:
        tm = TM_MAX
        m_pad = -(-M // tm) * tm
    if m_pad != M:
        xt = jnp.pad(xt, ((0, 0), (0, m_pad - M)))

    itemsize = jnp.dtype(out_dtype).itemsize
    cost = pl.CostEstimate(
        flops=2 * M * S * P,
        transcendentals=0,
        bytes_accessed=itemsize * (M * S + M * P + P * S + P),
    )

    out_t = pl.pallas_call(
        _shared_linear_kernel,
        out_shape=jax.ShapeDtypeStruct((P, m_pad), out_dtype),
        grid_spec=pltpu.PrefetchScalarGridSpec(
            num_scalar_prefetch=0,
            grid=(m_pad // tm,),
            in_specs=[
                pl.BlockSpec((P, S), lambda j: (0, 0)),    # W: resident, DMA'd once
                pl.BlockSpec((P, 1), lambda j: (0, 0)),    # bias: resident
                pl.BlockSpec((S, tm), lambda j: (0, j)),   # lane tile of x^T
            ],
            out_specs=pl.BlockSpec((P, tm), lambda j: (0, j)),
        ),
        compiler_params=pltpu.CompilerParams(
            dimension_semantics=("parallel",),
            vmem_limit_bytes=32 * 1024 * 1024,   # tiles are tiny; safe on v5e/v6e/v7x
        ),
        cost_estimate=cost,
    )(weight, bias.reshape(P, 1), xt)

    return out_t[:, :M].T.reshape(B, C, P)


# ---------------------------------------------------------------------------
# Per-channel path (individual=True): one whole-batch matmul per channel.
# ---------------------------------------------------------------------------
def _individual_linear_kernel(w_ref, b_ref, x_ref, o_ref):
    # w_ref: (1, P, S)  channel weight
    # b_ref: (1, 1, P)  channel bias
    # x_ref: (1, B, S)  whole batch for this channel
    # o_ref: (1, B, P)
    x = x_ref[0]                                   # (B, S)
    w = w_ref[0]                                   # (P, S)
    acc = lax.dot_general(
        x, w, (((1,), (1,)), ((), ())), preferred_element_type=jnp.float32
    )                                              # (B, P)
    acc = acc + b_ref[0]                           # (1, P) broadcasts over batch
    o_ref[0] = acc.astype(o_ref.dtype)


def _predict_individual(x, weight, bias, out_dtype):
    B, C, S = x.shape
    _, P, _ = weight.shape

    xc = jnp.transpose(x, (1, 0, 2))               # (C, B, S): full batch per channel
    b3 = bias.reshape(C, 1, P)

    itemsize = jnp.dtype(out_dtype).itemsize
    cost = pl.CostEstimate(
        flops=2 * B * C * S * P,
        transcendentals=0,
        bytes_accessed=itemsize * (B * C * S + B * C * P + C * P * S + C * P),
    )

    out_c = pl.pallas_call(
        _individual_linear_kernel,
        out_shape=jax.ShapeDtypeStruct((C, B, P), out_dtype),
        grid_spec=pltpu.PrefetchScalarGridSpec(
            num_scalar_prefetch=0,
            grid=(C,),
            in_specs=[
                pl.BlockSpec((1, P, S), lambda c: (c, 0, 0)),
                pl.BlockSpec((1, 1, P), lambda c: (c, 0, 0)),
                pl.BlockSpec((1, B, S), lambda c: (c, 0, 0)),
            ],
            out_specs=pl.BlockSpec((1, B, P), lambda c: (c, 0, 0)),
        ),
        compiler_params=pltpu.CompilerParams(
            dimension_semantics=("parallel",),
            vmem_limit_bytes=32 * 1024 * 1024,
        ),
        cost_estimate=cost,
    )(weight, b3, xc)

    return jnp.transpose(out_c, (1, 0, 2))         # (B, C, P)


# ---------------------------------------------------------------------------
# Module-level forward (matches Predict.forward in eval mode).
# ---------------------------------------------------------------------------
def predict_forward(x, weight, bias, *, individual):
    """Forward of MSGBlock.Predict.

    individual=False: x (B, c_out, seq_len), weight (pred_len, seq_len), bias (pred_len,)
    individual=True : x (B, c_out, seq_len), weight (c_out, pred_len, seq_len),
                      bias (c_out, pred_len)
    Returns (B, c_out, pred_len).
    """
    out_dtype = jnp.result_type(x.dtype, weight.dtype)
    if not jnp.issubdtype(out_dtype, jnp.floating):
        # v7x MXU has no integer paths; keep the matmul on the fast path.
        out_dtype = jnp.float32
    x = x.astype(out_dtype)
    weight = weight.astype(out_dtype)
    bias = bias.astype(out_dtype)

    # TODO(synk): training-mode dropout (stateful pltpu PRNG mask) not implemented;
    # this matches module.eval() semantics where nn.Dropout is the identity.
    if individual:
        return _predict_individual(x, weight, bias, out_dtype)
    return _predict_shared(x, weight, bias, out_dtype)


if __name__ == "__main__":
    key = jax.random.PRNGKey(0)
    k1, k2, k3, k4, k5 = jax.random.split(key, 5)

    # Small shapes consistent with Predict: batch, c_out, seq_len, pred_len
    B, C, S, P = 2, 4, 16, 8
    x = jax.random.normal(k1, (B, C, S), dtype=jnp.float32)

    # ---- shared (individual=False) ----
    w = jax.random.normal(k2, (P, S), dtype=jnp.float32) / jnp.sqrt(S)
    b = jax.random.normal(k3, (P,), dtype=jnp.float32)
    out_shared = jax.block_until_ready(predict_forward(x, w, b, individual=False))
    ref_shared = jnp.einsum("bcs,ps->bcp", x, w) + b
    assert out_shared.shape == (B, C, P), out_shared.shape
    assert jnp.allclose(out_shared, ref_shared, atol=1e-4, rtol=1e-4), \
        "shared path mismatch vs reference"

    # ---- per-channel (individual=True) ----
    wi = jax.random.normal(k4, (C, P, S), dtype=jnp.float32) / jnp.sqrt(S)
    bi = jax.random.normal(k5, (C, P), dtype=jnp.float32)
    out_ind = jax.block_until_ready(predict_forward(x, wi, bi, individual=True))
    ref_ind = jnp.einsum("bcs,cps->bcp", x, wi) + bi[None, :, :]
    assert out_ind.shape == (B, C, P), out_ind.shape
    assert jnp.allclose(out_ind, ref_ind, atol=1e-4, rtol=1e-4), \
        "individual path mismatch vs reference"

    print("KERNEL_OK")
</pallas_src>

<mosaic_0001>
module attributes {stable_mosaic.version = 11 : i64} {
  func.func @_shared_linear_kernel(%arg0: i32, %arg1: memref<8x16xf32, #tpu.memory_space<vmem>>, %arg2: memref<8x1xf32, #tpu.memory_space<vmem>>, %arg3: memref<16x8xf32, #tpu.memory_space<vmem>>, %arg4: memref<8x8xf32, #tpu.memory_space<vmem>>) attributes {dimension_semantics = [#tpu.dimension_semantics<parallel>], iteration_bounds = array<i64: 1>, scalar_prefetch = 0 : i64, scratch_operands = 0 : i64, tpu.core_type = #tpu.core_type<tc>, window_params = [{pipeline_mode = #tpu.pipeline_mode<synchronous>, transform_indices = @transform_0, window_bounds = array<i64: 8, 16>}, {pipeline_mode = #tpu.pipeline_mode<synchronous>, transform_indices = @transform_1, window_bounds = array<i64: 8, 1>}, {transform_indices = @transform_2, window_bounds = array<i64: 16, 8>}, {transform_indices = @transform_3, window_bounds = array<i64: 8, 8>}]} {
    %c0 = arith.constant 0 : index
    %c0_0 = arith.constant 0 : index
    %0 = vector.load %arg1[%c0, %c0_0] : memref<8x16xf32, #tpu.memory_space<vmem>>, vector<8x16xf32>
    %c0_1 = arith.constant 0 : index
    %c0_2 = arith.constant 0 : index
    %1 = vector.load %arg3[%c0_1, %c0_2] : memref<16x8xf32, #tpu.memory_space<vmem>>, vector<16x8xf32>
    %cst = arith.constant dense<0.000000e+00> : vector<8x8xf32>
    %2 = tpu.matmul %0, %1, %cst {dimension_numbers = #tpu.dot_dimension_numbers<[1], [0], [0], [1], [0, 0, 1, 1], [], []>} : vector<8x16xf32>, vector<16x8xf32>, vector<8x8xf32> -> vector<8x8xf32>
    %c0_3 = arith.constant 0 : index
    %c0_4 = arith.constant 0 : index
    %3 = vector.load %arg2[%c0_3, %c0_4] : memref<8x1xf32, #tpu.memory_space<vmem>>, vector<8x1xf32>
    %4 = vector.broadcast %3 : vector<8x1xf32> to vector<8x8xf32>
    %5 = arith.addf %2, %4 : vector<8x8xf32>
    %c0_5 = arith.constant 0 : index
    %c0_6 = arith.constant 0 : index
    %6 = vector.load %arg4[%c0_5, %c0_6] : memref<8x8xf32, #tpu.memory_space<vmem>>, vector<8x8xf32>
    tpu.vector_store %arg4[%c0_5, %c0_6], %5 {strides = array<i32>} : memref<8x8xf32, #tpu.memory_space<vmem>>, vector<8x8xf32>,
    return
  }
  func.func @transform_0(%arg0: i32) -> (i32, i32) {
    %c0_i32 = arith.constant 0 : i32
    %c0_i32_0 = arith.constant 0 : i32
    %c0_i32_1 = arith.constant 0 : i32
    return %c0_i32, %c0_i32_0 : i32, i32
  }
  func.func @transform_1(%arg0: i32) -> (i32, i32) {
    %c0_i32 = arith.constant 0 : i32
    %c0_i32_0 = arith.constant 0 : i32
    %c0_i32_1 = arith.constant 0 : i32
    return %c0_i32, %c0_i32_0 : i32, i32
  }
  func.func @transform_2(%arg0: i32) -> (i32, i32) {
    %c0_i32 = arith.constant 0 : i32
    %c0_i32_0 = arith.constant 0 : i32
    return %c0_i32, %arg0 : i32, i32
  }
  func.func @transform_3(%arg0: i32) -> (i32, i32) {
    %c0_i32 = arith.constant 0 : i32
    %c0_i32_0 = arith.constant 0 : i32
    return %c0_i32, %arg0 : i32, i32
  }
}

</mosaic_0001>

<bundles_post_ra>
// kernel: tpu_custom_call.1
= control target key start
LH: loop header
LB: loop body
LE: loop exit
PB: predicated region body
PF: predicated region fallthrough
CT: control target
= control target key end

     0   :  { %vm24_vm0 = vcmask 130048   ;;  %v96_v3 = vmov 0   ;;  %s133_s0 = inlined_call_operand.vmem [shape: f32[8,16], index: 0, kind: input, shape index: {}]   ;;  %s134_s1 = inlined_call_operand.vmem [shape: f32[8,1], index: 1, kind: input, shape index: {}]   ;;  %s135_s2 = inlined_call_operand.vmem [shape: f32[16,8], index: 2, kind: input, shape index: {}]   ;;  %s136_s3 = inlined_call_operand.hbm [shape: f32[8,8], index: 3, kind: output, shape index: {}]  }
   0x1   :  { %v17_v0 = vld [vmem:[%s135_s2 + $0x8] sm:$0xff]  ;;  %v16_v1 = vld [vmem:[%s135_s2] sm:$0xff]  ;;  %69 = vset.pattern.permute.xlu0 %v96_v3 }
   0x2   :  { %42 = vmatpush.msra.mxu0 %v17_v0  ;;  %v15_v2 = vld [vmem:[%s133_s0] sm:$0xff] }
   0x3   :  { %v18_v4 = vld [vmem:[%s134_s1] sm:$0xff] }
   0x4   :  { %8 = vsyncpa [#allocation3], 0  ;;  %21 = vperm.xlu0 %69, %v18_v4   ;;  %43 = vmatpush.msra.mxu0 %v16_v1  ;;  %s97_s20 = smov [#allocation2]   ;;  %s57_s23 = sshll.u32 %s136_s3, 4  ;;  %vm48_vm1 = vcmask 64512   ;;  %s58_s23 = int_to_ptr.hbm [resolvable:$true] %s57_s23 }
   0x5   :  { %66 = vmatmul.msk.f32.vlgmr.msra.gmra.mxu0 %vm24_vm0, %v15_v2  ;;  %s55_s21 = sshll.u32 %s97_s20, 4  ;;  %s56_s21 = int_to_ptr.vmem [resolvable:$true] %s55_s21 }
  0x76   :  { %v22_v5 = vpop.permute.xlu0 %21 }
  0x82   :  { %v45_v6 = vpop.f32.mrf.mxu0 }
  0x83   :  { %v46_v7 = vadd.f32 %v45_v6, %v22_v5 }
  0x85   :  { %49 = vst.msk [vmem:[#allocation2] sm:$0xff] %vm48_vm1, %v46_v7 }
  0x86   :  { %60 = dma.vmem_to_hbm [thread:$0]  %s56_s21, 128, %s58_s23, [#allocation3]  }
  0x87   :  { %94 = dma.done.wait [#allocation3], 128  }
  0x88   :  { %95 = vsyncadd [#allocation3], 4294967168 }
  0x89   :  { %65 = vsyncpa [#allocation3], 1 }

</bundles_post_ra>
